<compile_context>
chip_gen: v5e
topology: v5e:2x2
jax: 0.10.0
libtpu: 0.0.40
codegen_flags: <defaults>
</compile_context>

<pallas_src>
import functools
import math

import jax
import jax.numpy as jnp
from jax import lax
from jax.experimental import pallas as pl
from jax.experimental.pallas import tpu as pltpu

_INV_SQRT2 = 1.0 / math.sqrt(2.0)


def _round_up(n, m):
    return ((n + m - 1) // m) * m


def _ff_kernel(x_ref, w1_ref, b1_ref, w2_ref, p_ref, o_ref, acc_ref, *, out_dim):
    # x_ref:  (TM, IN_p)      w1_ref: (IN_p, TK)   b1_ref: (1, TK)
    # w2_ref: (TK, OUT_p)     p_ref:  (3, OUT_p)   [b2; gamma; beta]
    # o_ref:  (TM, OUT_p)     acc_ref: (TM, OUT_p) f32 scratch
    k = pl.program_id(1)
    nk = pl.num_programs(1)

    @pl.when(k == 0)
    def _():
        acc_ref[...] = jnp.zeros_like(acc_ref)

    # First matmul chunk: native-dtype inputs on the MXU, f32 accumulation.
    h = jnp.dot(x_ref[...], w1_ref[...], preferred_element_type=jnp.float32)
    h = h + b1_ref[...].astype(jnp.float32)

    # Exact (erf-based) GELU — matches F.gelu default.  erf goes to the EUP.
    h = 0.5 * h * (1.0 + lax.erf(h * _INV_SQRT2))

    # Second matmul chunk, accumulated over the HID reduction axis.
    acc_ref[...] += jnp.dot(h.astype(w2_ref.dtype), w2_ref[...],
                            preferred_element_type=jnp.float32)

    @pl.when(k == nk - 1)
    def _():
        p = p_ref[...].astype(jnp.float32)          # (3, OUT_p)
        y = acc_ref[...] + p[0:1, :]                # + b2

        # Masked LayerNorm over the real OUT columns (padding columns are 0
        # but must not contribute to mean/var).
        mask = lax.broadcasted_iota(jnp.int32, y.shape, 1) < out_dim
        inv_n = 1.0 / float(out_dim)
        mean = jnp.sum(jnp.where(mask, y, 0.0), axis=-1, keepdims=True) * inv_n
        cent = jnp.where(mask, y - mean, 0.0)
        var = jnp.sum(cent * cent, axis=-1, keepdims=True) * inv_n
        y_hat = cent * lax.rsqrt(var + 1e-6)
        out = y_hat * p[1:2, :] + p[2:3, :]         # * gamma + beta
        o_ref[...] = out.astype(o_ref.dtype)


def feed_forward(x, w1, b1, w2, b2, gamma, beta, *, tile_m=256, tile_k=512):
    """x: (B, S, IN). Returns (B, S, OUT).

    PyTorch parameter layout:
      w1: (HID, IN), b1: (HID,), w2: (OUT, HID), b2: (OUT,), gamma/beta: (OUT,)
    """
    B, S, IN = x.shape
    HID = w1.shape[0]
    OUT = w2.shape[0]
    M = B * S

    # --- padded / tiled geometry -------------------------------------------
    IN_p = _round_up(IN, 128)
    OUT_p = _round_up(OUT, 128)
    tile_k = min(tile_k, _round_up(HID, 128))       # multiple of 128
    HID_p = _round_up(HID, tile_k)                  # multiple of tile_k
    tile_m = min(tile_m, _round_up(M, 8))           # multiple of 8
    M_p = _round_up(M, tile_m)

    grid = (M_p // tile_m, HID_p // tile_k)

    # --- pad operands (zeros are benign: gelu(0)=0, zero weight rows/cols) --
    x2 = jnp.zeros((M_p, IN_p), x.dtype).at[:M, :IN].set(x.reshape(M, IN))
    w1_t = jnp.zeros((IN_p, HID_p), w1.dtype).at[:IN, :HID].set(w1.T)
    b1_p = jnp.zeros((1, HID_p), jnp.float32).at[0, :HID].set(b1.astype(jnp.float32))
    w2_t = jnp.zeros((HID_p, OUT_p), w2.dtype).at[:HID, :OUT].set(w2.T)
    params = (jnp.zeros((3, OUT_p), jnp.float32)
              .at[0, :OUT].set(b2.astype(jnp.float32))
              .at[1, :OUT].set(gamma.astype(jnp.float32))
              .at[2, :OUT].set(beta.astype(jnp.float32)))

    # --- cost estimate for the XLA scheduler --------------------------------
    itemsize = jnp.dtype(x.dtype).itemsize
    w_itemsize = jnp.dtype(w1.dtype).itemsize
    cost = pl.CostEstimate(
        flops=int(2 * M_p * HID_p * (IN_p + OUT_p)),
        transcendentals=int(M_p * HID_p),
        bytes_accessed=int(x2.size * itemsize + w1_t.size * w_itemsize
                           + w2_t.size * w_itemsize + b1_p.size * 4
                           + params.size * 4 + M_p * OUT_p * itemsize),
    )

    # --- VMEM budget: only raise the scoped limit if this config needs it ---
    vmem_est = (2 * (tile_m * IN_p * itemsize            # x tile (double-buffered)
                     + IN_p * tile_k * w_itemsize        # w1 chunk
                     + tile_k * 4                        # b1 chunk
                     + tile_k * OUT_p * w_itemsize       # w2 chunk
                     + 3 * OUT_p * 4                     # params
                     + tile_m * OUT_p * itemsize)        # out tile
                + tile_m * OUT_p * 4)                    # f32 accumulator
    compiler_kwargs = dict(dimension_semantics=("parallel", "arbitrary"))
    if vmem_est > 24 * 1024 * 1024:
        # Note: re-derive tile_m / tile_k per generation; v7x has only 64 MiB VMEM.
        compiler_kwargs["vmem_limit_bytes"] = min(int(vmem_est * 2), 64 * 1024 * 1024)

    out = pl.pallas_call(
        functools.partial(_ff_kernel, out_dim=OUT),
        out_shape=jax.ShapeDtypeStruct((M_p, OUT_p), x.dtype),
        grid_spec=pltpu.PrefetchScalarGridSpec(
            num_scalar_prefetch=0,
            grid=grid,
            in_specs=[
                pl.BlockSpec((tile_m, IN_p), lambda i, k: (i, 0)),   # x rows
                pl.BlockSpec((IN_p, tile_k), lambda i, k: (0, k)),   # w1^T chunk
                pl.BlockSpec((1, tile_k), lambda i, k: (0, k)),      # b1 chunk
                pl.BlockSpec((tile_k, OUT_p), lambda i, k: (k, 0)),  # w2^T chunk
                pl.BlockSpec((3, OUT_p), lambda i, k: (0, 0)),       # b2/gamma/beta
            ],
            out_specs=pl.BlockSpec((tile_m, OUT_p), lambda i, k: (i, 0)),
            scratch_shapes=[pltpu.VMEM((tile_m, OUT_p), jnp.float32)],
        ),
        compiler_params=pltpu.CompilerParams(**compiler_kwargs),
        cost_estimate=cost,
    )(x2, w1_t, b1_p, w2_t, params)

    return out[:M, :OUT].reshape(B, S, OUT)


def _reference(x, w1, b1, w2, b2, gamma, beta):
    h = jnp.einsum("bsi,hi->bsh", x, w1) + b1
    h = 0.5 * h * (1.0 + lax.erf(h / jnp.sqrt(2.0)))
    y = jnp.einsum("bsh,oh->bso", h, w2) + b2
    mean = jnp.mean(y, axis=-1, keepdims=True)
    var = jnp.mean((y - mean) ** 2, axis=-1, keepdims=True)
    return (y - mean) * lax.rsqrt(var + 1e-6) * gamma + beta


if __name__ == "__main__":
    # Module-implied small shapes: input_size=32, hidden_size=64, output_size=32
    B, S = 2, 8
    IN, HID, OUT = 32, 64, 32

    key = jax.random.PRNGKey(0)
    kx, kw1, kb1, kw2, kb2 = jax.random.split(key, 5)

    x = jax.random.normal(kx, (B, S, IN), dtype=jnp.float32)

    # nn.Linear default init: U(-1/sqrt(fan_in), 1/sqrt(fan_in))
    lim1 = 1.0 / math.sqrt(IN)
    w1 = jax.random.uniform(kw1, (HID, IN), minval=-lim1, maxval=lim1, dtype=jnp.float32)
    b1 = jax.random.uniform(kb1, (HID,), minval=-lim1, maxval=lim1, dtype=jnp.float32)
    lim2 = 1.0 / math.sqrt(HID)
    w2 = jax.random.uniform(kw2, (OUT, HID), minval=-lim2, maxval=lim2, dtype=jnp.float32)
    b2 = jax.random.uniform(kb2, (OUT,), minval=-lim2, maxval=lim2, dtype=jnp.float32)

    # nn.LayerNorm default affine params
    gamma = jnp.ones((OUT,), dtype=jnp.float32)
    beta = jnp.zeros((OUT,), dtype=jnp.float32)

    out = feed_forward(x, w1, b1, w2, b2, gamma, beta)
    out = jax.block_until_ready(out)

    ref = _reference(x, w1, b1, w2, b2, gamma, beta)
    assert out.shape == (B, S, OUT)
    assert jnp.allclose(out, ref, atol=1e-4, rtol=1e-4), "mismatch vs reference"

    print("KERNEL_OK")
</pallas_src>

<mosaic_0001>
module attributes {stable_mosaic.version = 11 : i64} {
  func.func @_ff_kernel(%arg0: i32, %arg1: i32, %arg2: memref<16x128xf32, #tpu.memory_space<vmem>>, %arg3: memref<128x128xf32, #tpu.memory_space<vmem>>, %arg4: memref<1x128xf32, #tpu.memory_space<vmem>>, %arg5: memref<128x128xf32, #tpu.memory_space<vmem>>, %arg6: memref<3x128xf32, #tpu.memory_space<vmem>>, %arg7: memref<16x128xf32, #tpu.memory_space<vmem>>, %arg8: memref<16x128xf32, #tpu.memory_space<vmem>>) attributes {dimension_semantics = [#tpu.dimension_semantics<parallel>, #tpu.dimension_semantics<arbitrary>], iteration_bounds = array<i64: 1, 1>, scalar_prefetch = 0 : i64, scratch_operands = 1 : i64, tpu.core_type = #tpu.core_type<tc>, window_params = [{transform_indices = @transform_0, window_bounds = array<i64: 16, 128>}, {transform_indices = @transform_1, window_bounds = array<i64: 128, 128>}, {transform_indices = @transform_2, window_bounds = array<i64: 1, 128>}, {transform_indices = @transform_3, window_bounds = array<i64: 128, 128>}, {pipeline_mode = #tpu.pipeline_mode<synchronous>, transform_indices = @transform_4, window_bounds = array<i64: 3, 128>}, {transform_indices = @transform_5, window_bounds = array<i64: 16, 128>}]} {
    %c0_i32 = arith.constant 0 : i32
    %0 = arith.cmpi eq, %arg1, %c0_i32 : i32
    %1 = arith.extui %0 : i1 to i32
    %c0_i32_0 = arith.constant 0 : i32
    %2 = arith.cmpi ne, %1, %c0_i32_0 : i32
    scf.if %2 {
      %cst_18 = arith.constant 0.000000e+00 : f32
      %25 = vector.broadcast %cst_18 : f32 to vector<16x128xf32>
      %c0_19 = arith.constant 0 : index
      %c0_20 = arith.constant 0 : index
      %26 = vector.load %arg8[%c0_19, %c0_20] : memref<16x128xf32, #tpu.memory_space<vmem>>, vector<16x128xf32>
      tpu.vector_store %arg8[%c0_19, %c0_20], %25 {strides = array<i32>} : memref<16x128xf32, #tpu.memory_space<vmem>>, vector<16x128xf32>,
    } else {
    }
    %c0 = arith.constant 0 : index
    %c0_1 = arith.constant 0 : index
    %3 = vector.load %arg2[%c0, %c0_1] : memref<16x128xf32, #tpu.memory_space<vmem>>, vector<16x128xf32>
    %c0_2 = arith.constant 0 : index
    %c0_3 = arith.constant 0 : index
    %4 = vector.load %arg3[%c0_2, %c0_3] : memref<128x128xf32, #tpu.memory_space<vmem>>, vector<128x128xf32>
    %cst = arith.constant dense<0.000000e+00> : vector<16x128xf32>
    %5 = tpu.matmul %3, %4, %cst {dimension_numbers = #tpu.dot_dimension_numbers<[1], [0], [0], [1], [0, 0, 1, 1], [], []>} : vector<16x128xf32>, vector<128x128xf32>, vector<16x128xf32> -> vector<16x128xf32>
    %c0_4 = arith.constant 0 : index
    %c0_5 = arith.constant 0 : index
    %6 = vector.load %arg4[%c0_4, %c0_5] : memref<1x128xf32, #tpu.memory_space<vmem>>, vector<1x128xf32>
    %7 = vector.broadcast %6 : vector<1x128xf32> to vector<16x128xf32>
    %8 = arith.addf %5, %7 : vector<16x128xf32>
    %cst_6 = arith.constant 5.000000e-01 : f32
    %9 = vector.broadcast %cst_6 : f32 to vector<16x128xf32>
    %10 = arith.mulf %9, %8 : vector<16x128xf32>
    %cst_7 = arith.constant 0.707106769 : f32
    %11 = vector.broadcast %cst_7 : f32 to vector<16x128xf32>
    %12 = arith.mulf %8, %11 : vector<16x128xf32>
    %13 = math.erf %12 : vector<16x128xf32>
    %cst_8 = arith.constant 1.000000e+00 : f32
    %14 = vector.broadcast %cst_8 : f32 to vector<16x128xf32>
    %15 = arith.addf %14, %13 : vector<16x128xf32>
    %16 = arith.mulf %10, %15 : vector<16x128xf32>
    %c0_9 = arith.constant 0 : index
    %c0_10 = arith.constant 0 : index
    %17 = vector.load %arg8[%c0_9, %c0_10] : memref<16x128xf32, #tpu.memory_space<vmem>>, vector<16x128xf32>
    %c0_11 = arith.constant 0 : index
    %c0_12 = arith.constant 0 : index
    %18 = vector.load %arg5[%c0_11, %c0_12] : memref<128x128xf32, #tpu.memory_space<vmem>>, vector<128x128xf32>
    %cst_13 = arith.constant dense<0.000000e+00> : vector<16x128xf32>
    %19 = tpu.matmul %16, %18, %cst_13 {dimension_numbers = #tpu.dot_dimension_numbers<[1], [0], [0], [1], [0, 0, 1, 1], [], []>} : vector<16x128xf32>, vector<128x128xf32>, vector<16x128xf32> -> vector<16x128xf32>
    %20 = arith.addf %17, %19 : vector<16x128xf32>
    %c0_14 = arith.constant 0 : index
    %c0_15 = arith.constant 0 : index
    %21 = vector.load %arg8[%c0_14, %c0_15] : memref<16x128xf32, #tpu.memory_space<vmem>>, vector<16x128xf32>
    tpu.vector_store %arg8[%c0_14, %c0_15], %20 {strides = array<i32>} : memref<16x128xf32, #tpu.memory_space<vmem>>, vector<16x128xf32>,
    %c0_i32_16 = arith.constant 0 : i32
    %22 = arith.cmpi eq, %arg1, %c0_i32_16 : i32
    %23 = arith.extui %22 : i1 to i32
    %c0_i32_17 = arith.constant 0 : i32
    %24 = arith.cmpi ne, %23, %c0_i32_17 : i32
    scf.if %24 {
      %c0_18 = arith.constant 0 : index
      %c0_19 = arith.constant 0 : index
      %25 = vector.load %arg6[%c0_18, %c0_19] : memref<3x128xf32, #tpu.memory_space<vmem>>, vector<3x128xf32>
      %c0_20 = arith.constant 0 : index
      %c0_21 = arith.constant 0 : index
      %26 = vector.load %arg8[%c0_20, %c0_21] : memref<16x128xf32, #tpu.memory_space<vmem>>, vector<16x128xf32>
      %27 = vector.extract_strided_slice %25 {offsets = [0, 0], sizes = [1, 128], strides = [1, 1]} : vector<3x128xf32> to vector<1x128xf32>
      %28 = vector.broadcast %27 : vector<1x128xf32> to vector<16x128xf32>
      %29 = arith.addf %26, %28 : vector<16x128xf32>
      %30 = tpu.iota {dimensions = array<i32: 1>} : vector<16x128xi32>
      %c32_i32 = arith.constant 32 : i32
      %31 = vector.broadcast %c32_i32 : i32 to vector<16x128xi32>
      %32 = arith.cmpi slt, %30, %31 : vector<16x128xi32>
      %cst_22 = arith.constant 0.000000e+00 : f32
      %33 = vector.broadcast %cst_22 : f32 to vector<16x128xf32>
      %34 = arith.select %32, %29, %33 : vector<16x128xi1>, vector<16x128xf32>
      %cst_23 = arith.constant dense<0.000000e+00> : vector<16xf32>
      %35 = vector.multi_reduction <add>, %34, %cst_23 [1] : vector<16x128xf32> to vector<16xf32>
      %36 = vector.shape_cast %35 : vector<16xf32> to vector<16x1xf32>
      %cst_24 = arith.constant 3.125000e-02 : f32
      %37 = vector.broadcast %cst_24 : f32 to vector<16x1xf32>
      %38 = arith.mulf %36, %37 : vector<16x1xf32>
      %39 = vector.broadcast %38 : vector<16x1xf32> to vector<16x128xf32>
      %40 = arith.subf %29, %39 : vector<16x128xf32>
      %cst_25 = arith.constant 0.000000e+00 : f32
      %41 = vector.broadcast %cst_25 : f32 to vector<16x128xf32>
      %42 = arith.select %32, %40, %41 : vector<16x128xi1>, vector<16x128xf32>
      %43 = arith.mulf %42, %42 : vector<16x128xf32>
      %cst_26 = arith.constant dense<0.000000e+00> : vector<16xf32>
      %44 = vector.multi_reduction <add>, %43, %cst_26 [1] : vector<16x128xf32> to vector<16xf32>
      %45 = vector.shape_cast %44 : vector<16xf32> to vector<16x1xf32>
      %cst_27 = arith.constant 3.125000e-02 : f32
      %46 = vector.broadcast %cst_27 : f32 to vector<16x1xf32>
      %47 = arith.mulf %45, %46 : vector<16x1xf32>
      %cst_28 = arith.constant 9.99999997E-7 : f32
      %48 = vector.broadcast %cst_28 : f32 to vector<16x1xf32>
      %49 = arith.addf %47, %48 : vector<16x1xf32>
      %50 = math.rsqrt %49 : vector<16x1xf32>
      %51 = vector.broadcast %50 : vector<16x1xf32> to vector<16x128xf32>
      %52 = arith.mulf %42, %51 : vector<16x128xf32>
      %53 = vector.extract_strided_slice %25 {offsets = [1, 0], sizes = [1, 128], strides = [1, 1]} : vector<3x128xf32> to vector<1x128xf32>
      %54 = vector.broadcast %53 : vector<1x128xf32> to vector<16x128xf32>
      %55 = arith.mulf %52, %54 : vector<16x128xf32>
      %56 = vector.extract_strided_slice %25 {offsets = [2, 0], sizes = [1, 128], strides = [1, 1]} : vector<3x128xf32> to vector<1x128xf32>
      %57 = vector.broadcast %56 : vector<1x128xf32> to vector<16x128xf32>
      %58 = arith.addf %55, %57 : vector<16x128xf32>
      %c0_29 = arith.constant 0 : index
      %c0_30 = arith.constant 0 : index
      %59 = vector.load %arg7[%c0_29, %c0_30] : memref<16x128xf32, #tpu.memory_space<vmem>>, vector<16x128xf32>
      tpu.vector_store %arg7[%c0_29, %c0_30], %58 {strides = array<i32>} : memref<16x128xf32, #tpu.memory_space<vmem>>, vector<16x128xf32>,
    } else {
    }
    return
  }
  func.func @transform_0(%arg0: i32, %arg1: i32) -> (i32, i32) {
    %c0_i32 = arith.constant 0 : i32
    %c0_i32_0 = arith.constant 0 : i32
    return %arg0, %c0_i32 : i32, i32
  }
  func.func @transform_1(%arg0: i32, %arg1: i32) -> (i32, i32) {
    %c0_i32 = arith.constant 0 : i32
    %c0_i32_0 = arith.constant 0 : i32
    return %c0_i32, %arg1 : i32, i32
  }
  func.func @transform_2(%arg0: i32, %arg1: i32) -> (i32, i32) {
    %c0_i32 = arith.constant 0 : i32
    %c0_i32_0 = arith.constant 0 : i32
    return %c0_i32, %arg1 : i32, i32
  }
  func.func @transform_3(%arg0: i32, %arg1: i32) -> (i32, i32) {
    %c0_i32 = arith.constant 0 : i32
    %c0_i32_0 = arith.constant 0 : i32
    return %arg1, %c0_i32 : i32, i32
  }
  func.func @transform_4(%arg0: i32, %arg1: i32) -> (i32, i32) {
    %c0_i32 = arith.constant 0 : i32
    %c0_i32_0 = arith.constant 0 : i32
    %c0_i32_1 = arith.constant 0 : i32
    return %c0_i32, %c0_i32_0 : i32, i32
  }
  func.func @transform_5(%arg0: i32, %arg1: i32) -> (i32, i32) {
    %c0_i32 = arith.constant 0 : i32
    %c0_i32_0 = arith.constant 0 : i32
    return %arg0, %c0_i32 : i32, i32
  }
}

</mosaic_0001>

<bundles_post_ra>
// kernel: tpu_custom_call.1
= control target key start
LH: loop header
LB: loop body
LE: loop exit
PB: predicated region body
PF: predicated region fallthrough
CT: control target
= control target key end

     0   :  { %10 = vsyncpa [#allocation4], 0  ;;  %s635_s0 = inlined_call_operand.hbm [shape: f32[16,128], index: 0, kind: input, shape index: {}]   ;;  %s636_s1 = inlined_call_operand.hbm [shape: f32[128,128], index: 1, kind: input, shape index: {}]   ;;  %s637_s2 = inlined_call_operand.vmem [shape: f32[1,128], index: 2, kind: input, shape index: {}]   ;;  %s638_s3 = inlined_call_operand.hbm [shape: f32[128,128], index: 3, kind: input, shape index: {}]   ;;  %s639_s4 = inlined_call_operand.hbm [shape: f32[3,128], index: 4, kind: input, shape index: {}]   ;;  %s640_s5 = inlined_call_operand.hbm [shape: f32[16,128], index: 5, kind: output, shape index: {}]  }
   0x1   :  { %11 = vsyncpa [#allocation7], 0 }
   0x2   :  { %12 = vsyncpa [#allocation10], 0 }
   0x3   :  { %13 = vsyncpa [#allocation5], 0  ;;  %s31_s20 = sshll.u32 %s636_s1, 4  ;;  %s529_s21 = smov [#allocation6]   ;;  %s32_s20 = int_to_ptr.hbm [resolvable:$true] %s31_s20 }
   0x4   :  { %s33_s22 = sshll.u32 %s529_s21, 4  ;;  %s18_s25 = sshll.u32 %s635_s0, 4  ;;  %s34_s22 = int_to_ptr.vmem [resolvable:$true] %s33_s22  ;;  %s19_s25 = int_to_ptr.hbm [resolvable:$true] %s18_s25 }
   0x5   :  { %s530_s26 = smov 128   ;;  %s531_s27 = smov 8  }
   0x6   :  { %39 = dma.hbm_to_vmem [thread:$0]  %s32_s20, 2048, %s34_s22, [#allocation7], %s530_s26, %s530_s26, %s531_s27  }
   0x7   :  { %s532_s28 = smov [#allocation3]   ;;  %s46_s1 = sshll.u32 %s638_s3, 4  ;;  %s47_s1 = int_to_ptr.hbm [resolvable:$true] %s46_s1 }
   0x8   :  { %s20_s29 = sshll.u32 %s532_s28, 4  ;;  %s60_s8 = sshll.u32 %s639_s4, 4  ;;  %s21_s29 = int_to_ptr.vmem [resolvable:$true] %s20_s29  ;;  %s61_s8 = int_to_ptr.hbm [resolvable:$true] %s60_s8 }
   0x9   :  { %26 = dma.hbm_to_vmem [thread:$0]  %s19_s25, 256, %s21_s29, [#allocation4], %s530_s26, %s530_s26, %s531_s27  }
   0xa   :  { %s533_s9 = smov [#allocation8]   ;;  %s534_s11 = smov [#allocation9]  }
   0xb   :  { %s48_s10 = sshll.u32 %s533_s9, 4  ;;  %s62_s3 = sshll.u32 %s534_s11, 4  ;;  %s49_s10 = int_to_ptr.vmem [resolvable:$true] %s48_s10  ;;  %s63_s3 = int_to_ptr.vmem [resolvable:$true] %s62_s3 }
   0xc   :  { %54 = dma.hbm_to_vmem [thread:$0]  %s47_s1, 2048, %s49_s10, [#allocation7], %s530_s26, %s530_s26, %s531_s27  }
   0xd   :  { %65 = dma.hbm_to_vmem [thread:$0]  %s61_s8, 64, %s63_s3, [#allocation10]  }
   0xe   :  { %521 = dma.done.wait [#allocation4], 256  }
   0xf   :  { %522 = vsyncadd [#allocation4], 4294967040 }
  0x10   :  { %523 = dma.done.wait [#allocation7], 4096  }
  0x11   :  { %524 = vsyncadd [#allocation7], 4294963200 }
  0x12   :  { %525 = dma.done.wait [#allocation10], 64  }
  0x13   :  { %526 = vsyncadd [#allocation10], 4294967232  ;;  %v105_v0 = vld [vmem:[#allocation6 + $0x78] sm:$0xff]  ;;  %v104_v1 = vld [vmem:[#allocation6 + $0x70] sm:$0xff]  ;;  %s336_s16 = sshll.u32 %s640_s5, 4  ;;  %s337_s16 = int_to_ptr.hbm [resolvable:$true] %s336_s16 }
  0x14   :  { %110 = vmatpush.msra.mxu0 %v105_v0  ;;  %353 = vmatpush.msra.mxu2 %v105_v0  ;;  %v103_v2 = vld [vmem:[#allocation6 + $0x68] sm:$0xff]  ;;  %v102_v3 = vld [vmem:[#allocation6 + $0x60] sm:$0xff]  ;;  %v101_v4 = vld [vmem:[#allocation6 + $0x58] sm:$0xff] }
  0x15   :  { %v100_v5 = vld [vmem:[#allocation6 + $0x50] sm:$0xff]  ;;  %v99_v6 = vld [vmem:[#allocation6 + $0x48] sm:$0xff]  ;;  %v98_v7 = vld [vmem:[#allocation6 + $0x40] sm:$0xff] }
  0x16   :  { %111 = vmatpush.msra.mxu0 %v104_v1  ;;  %354 = vmatpush.msra.mxu2 %v104_v1  ;;  %v97_v8 = vld [vmem:[#allocation6 + $0x38] sm:$0xff]  ;;  %v96_v9 = vld [vmem:[#allocation6 + $0x30] sm:$0xff]  ;;  %v95_v10 = vld [vmem:[#allocation6 + $0x28] sm:$0xff] }
  0x17   :  { %v94_v11 = vld [vmem:[#allocation6 + $0x20] sm:$0xff]  ;;  %v93_v12 = vld [vmem:[#allocation6 + $0x18] sm:$0xff]  ;;  %v92_v13 = vld [vmem:[#allocation6 + $0x10] sm:$0xff] }
  0x18   :  { %112 = vmatpush.msra.mxu0 %v103_v2  ;;  %355 = vmatpush.msra.mxu2 %v103_v2  ;;  %v91_v14 = vld [vmem:[#allocation6 + $0x8] sm:$0xff]  ;;  %v90_v15 = vld [vmem:[#allocation6] sm:$0xff]  ;;  %v88_v16 = vld [vmem:[#allocation3] sm:$0xff] }
  0x19   :  { %v89_v17 = vld [vmem:[#allocation3 + $0x8] sm:$0xff]  ;;  %v237_v19 = vld [vmem:[#allocation8 + $0x70] sm:$0xff]  ;;  %v236_v20 = vld [vmem:[#allocation8 + $0x68] sm:$0xff] }
  0x1a   :  { %113 = vmatpush.msra.mxu0 %v102_v3  ;;  %356 = vmatpush.msra.mxu2 %v102_v3  ;;  %v238_v18 = vld [vmem:[#allocation8 + $0x78] sm:$0xff]  ;;  %v235_v21 = vld [vmem:[#allocation8 + $0x60] sm:$0xff]  ;;  %v392_v22 = vld [vmem:[%s637_s2] ss:$0 sm:$0xff]  ;;  %s535_s2 = smov [#allocation11]  }
  0x1b   :  { %239 = vmatpush.msra.mxu1 %v238_v18  ;;  %369 = vmatpush.msra.mxu3 %v238_v18  ;;  %v234_v23 = vld [vmem:[#allocation8 + $0x58] sm:$0xff]  ;;  %v233_v25 = vld [vmem:[#allocation8 + $0x50] sm:$0xff]  ;;  %v232_v27 = vld [vmem:[#allocation8 + $0x48] sm:$0xff]  ;;  %s334_s13 = sshll.u32 %s535_s2, 4  ;;  %s335_s13 = int_to_ptr.vmem [resolvable:$true] %s334_s13 }
  0x1c   :  { %114 = vmatpush.msra.mxu0 %v101_v4  ;;  %357 = vmatpush.msra.mxu2 %v101_v4  ;;  %v231_v29 = vld [vmem:[#allocation8 + $0x40] sm:$0xff]  ;;  %v230_v30 = vld [vmem:[#allocation8 + $0x38] sm:$0xff]  ;;  %v229_v33 = vld [vmem:[#allocation8 + $0x30] sm:$0xff] }
  0x1d   :  { %240 = vmatpush.msra.mxu1 %v237_v19  ;;  %370 = vmatpush.msra.mxu3 %v237_v19  ;;  %v228_v36 = vld [vmem:[#allocation8 + $0x28] sm:$0xff]  ;;  %v227_v39 = vld [vmem:[#allocation8 + $0x20] sm:$0xff]  ;;  %v226_v43 = vld [vmem:[#allocation8 + $0x18] sm:$0xff] }
  0x1e   :  { %115 = vmatpush.msra.mxu0 %v100_v5  ;;  %358 = vmatpush.msra.mxu2 %v100_v5  ;;  %v225_v47 = vld [vmem:[#allocation8 + $0x10] sm:$0xff]  ;;  %v224_v52 = vld [vmem:[#allocation8 + $0x8] sm:$0xff]  ;;  %v223_v56 = vld [vmem:[#allocation8] sm:$0xff] }
  0x1f   :  { %241 = vmatpush.msra.mxu1 %v236_v20  ;;  %371 = vmatpush.msra.mxu3 %v236_v20 }
  0x20   :  { %116 = vmatpush.msra.mxu0 %v99_v6  ;;  %359 = vmatpush.msra.mxu2 %v99_v6 }
  0x21   :  { %242 = vmatpush.msra.mxu1 %v235_v21  ;;  %372 = vmatpush.msra.mxu3 %v235_v21 }
  0x22   :  { %117 = vmatpush.msra.mxu0 %v98_v7  ;;  %360 = vmatpush.msra.mxu2 %v98_v7 }
  0x23   :  { %243 = vmatpush.msra.mxu1 %v234_v23  ;;  %373 = vmatpush.msra.mxu3 %v234_v23 }
  0x24   :  { %118 = vmatpush.msra.mxu0 %v97_v8  ;;  %361 = vmatpush.msra.mxu2 %v97_v8 }
  0x25   :  { %244 = vmatpush.msra.mxu1 %v233_v25  ;;  %374 = vmatpush.msra.mxu3 %v233_v25 }
  0x26   :  { %119 = vmatpush.msra.mxu0 %v96_v9  ;;  %362 = vmatpush.msra.mxu2 %v96_v9 }
  0x27   :  { %245 = vmatpush.msra.mxu1 %v232_v27  ;;  %375 = vmatpush.msra.mxu3 %v232_v27 }
  0x28   :  { %120 = vmatpush.msra.mxu0 %v95_v10  ;;  %363 = vmatpush.msra.mxu2 %v95_v10 }
  0x29   :  { %246 = vmatpush.msra.mxu1 %v231_v29  ;;  %376 = vmatpush.msra.mxu3 %v231_v29 }
  0x2a   :  { %121 = vmatpush.msra.mxu0 %v94_v11  ;;  %364 = vmatpush.msra.mxu2 %v94_v11 }
  0x2b   :  { %247 = vmatpush.msra.mxu1 %v230_v30  ;;  %377 = vmatpush.msra.mxu3 %v230_v30 }
  0x2c   :  { %122 = vmatpush.msra.mxu0 %v93_v12  ;;  %365 = vmatpush.msra.mxu2 %v93_v12 }
  0x2d   :  { %248 = vmatpush.msra.mxu1 %v229_v33  ;;  %378 = vmatpush.msra.mxu3 %v229_v33 }
  0x2e   :  { %123 = vmatpush.msra.mxu0 %v92_v13  ;;  %366 = vmatpush.msra.mxu2 %v92_v13 }
  0x2f   :  { %249 = vmatpush.msra.mxu1 %v228_v36  ;;  %379 = vmatpush.msra.mxu3 %v228_v36 }
  0x30   :  { %124 = vmatpush.msra.mxu0 %v91_v14  ;;  %367 = vmatpush.msra.mxu2 %v91_v14 }
  0x31   :  { %250 = vmatpush.msra.mxu1 %v227_v39  ;;  %380 = vmatpush.msra.mxu3 %v227_v39 }
  0x32   :  { %125 = vmatpush.msra.mxu0 %v90_v15  ;;  %368 = vmatpush.msra.mxu2 %v90_v15 }
  0x33   :  { %126 = vmatmul.f32.vlgmr.msra.gmra.mxu0 %v88_v16  ;;  %129 = vmatmul.f32.vlgmr.msra.gmra.mxu2 %v89_v17 }
  0x34   :  { %251 = vmatpush.msra.mxu1 %v226_v43  ;;  %381 = vmatpush.msra.mxu3 %v226_v43 }
  0x36   :  { %252 = vmatpush.msra.mxu1 %v225_v47  ;;  %382 = vmatpush.msra.mxu3 %v225_v47 }
  0x38   :  { %253 = vmatpush.msra.mxu1 %v224_v52  ;;  %383 = vmatpush.msra.mxu3 %v224_v52 }
  0x3a   :  { %254 = vmatpush.msra.mxu1 %v223_v56  ;;  %384 = vmatpush.msra.mxu3 %v223_v56  ;;  %v275_v56 = vlaneseq }
  0xb0   :  { %v127_v24 = vpop.f32.mrf.mxu0 }
  0xb1   :  { %v590_v26 = vadd.f32 %v392_v22, %v127_v24 }
  0xb3   :  { %v593_v28 = vmul.f32 0.70710677, %v590_v26  ;;  %v133_v47 = vmul.f32 0.5, %v590_v26 }
  0xb5   :  { %v137_v31 = vmul.f32 %v593_v28, %v593_v28 }
  0xb6   :  { %v130_v32 = vpop.f32.mrf.mxu2 }
  0xb7   :  { %v597_v34 = vmin.f32 %v137_v31, 16.0  ;;  %v599_v35 = vadd.f32 %v392_v22, %v130_v32 }
  0xb9   :  { %v139_v37 = vmul.f32 2.1237322e-06, %v597_v34  ;;  %v603_v38 = vmul.f32 0.70710677, %v599_v35  ;;  %v150_v40 = vmul.f32 3.8918573e-05, %v597_v34 }
  0xbb   :  { %v140_v41 = vadd.f32 0.00028619796, %v139_v37  ;;  %v177_v42 = vmul.f32 %v603_v38, %v603_v38  ;;  %v151_v44 = vadd.f32 0.001143296, %v150_v40 }
  0xbd   :  { %v141_v45 = vmul.f32 %v140_v41, %v597_v34  ;;  %v178_v46 = vmin.f32 %v177_v42, 16.0  ;;  %v152_v48 = vmul.f32 %v151_v44, %v597_v34 }
  0xbf   :  { %v179_v49 = vmul.f32 2.1237322e-06, %v178_v46  ;;  %v190_v50 = vmul.f32 3.8918573e-05, %v178_v46  ;;  %v142_v51 = vadd.f32 0.0036580483, %v141_v45 }
  0xc0   :  { %v153_v53 = vadd.f32 0.014752088, %v152_v48 }
  0xc1   :  { %v180_v54 = vadd.f32 0.00028619796, %v179_v49  ;;  %v191_v55 = vadd.f32 0.001143296, %v190_v50  ;;  %v143_v60 = vmul.f32 %v142_v51, %v597_v34 }
  0xc2   :  { %v154_v57 = vmul.f32 %v153_v53, %v597_v34  ;;  %v134_v53 = vmul.f32 0.5, %v599_v35 }
  0xc3   :  { %v181_v58 = vmul.f32 %v180_v54, %v178_v46  ;;  %v192_v59 = vmul.f32 %v191_v55, %v178_v46  ;;  %v144_v2 = vadd.f32 0.05243302, %v143_v60 }
  0xc4   :  { %v155_v61 = vadd.f32 0.112945676, %v154_v57  ;;  %v620_v57 = vld [vmem:[#allocation9] sm:$0x7] }
  0xc5   :  { %v182_v62 = vadd.f32 0.0036580483, %v181_v58  ;;  %v193_v63 = vadd.f32 0.014752088, %v192_v59  ;;  %v145_v8 = vmul.f32 %v144_v2, %v597_v34  ;;  %v276_v58 = vand.u32 127, %v275_v56 }
  0xc6   :  { %v156_v0 = vmul.f32 %v155_v61, %v597_v34 }
  0xc7   :  { %v194_v1 = vmul.f32 %v193_v63, %v178_v46  ;;  %v183_v4 = vmul.f32 %v182_v62, %v178_v46  ;;  %v146_v13 = vadd.f32 0.18741608, %v145_v8  ;;  %vm277_vm8 = vcmp.lt.s32.totalorder %v276_v58, 32 }
  0xc8   :  { %v157_v3 = vadd.f32 0.4994258, %v156_v0 }
  0xc9   :  { %v195_v5 = vadd.f32 0.112945676, %v194_v1  ;;  %v184_v10 = vadd.f32 0.05243302, %v183_v4  ;;  %v147_v17 = vmul.f32 %v146_v13, %v597_v34 }
  0xca   :  { %v158_v6 = vmul.f32 %v157_v3, %v597_v34 }
  0xcb   :  { %v196_v7 = vmul.f32 %v195_v5, %v178_v46  ;;  %v185_v14 = vmul.f32 %v184_v10, %v178_v46  ;;  %v148_v21 = vadd.f32 1.1283791, %v147_v17 }
  0xcc   :  { %v159_v9 = vadd.f32 1.0, %v158_v6 }
  0xcd   :  { %v197_v11 = vadd.f32 0.4994258, %v196_v7  ;;  %v186_v18 = vadd.f32 0.18741608, %v185_v14  ;;  %v149_v31 = vmul.f32 %v148_v21, %v593_v28  ;;  %v322_v21 = vperm.slane %v620_v57, 1 }
  0xce   :  { %393 = vrcp.f32 %v159_v9  ;;  %v171_v22 = vand.u32 2147483648, %v159_v9  ;;  %v169_v27 = vand.u32 2147483647, %v159_v9  ;;  %vm165_vm1 = vweird.f32 %v159_v9 }
  0xcf   :  { %v198_v12 = vmul.f32 %v197_v11, %v178_v46  ;;  %v187_v24 = vmul.f32 %v186_v18, %v178_v46 }
  0xd0   :  { %v172_v32 = vor.u32 1.1754944e-38, %v171_v22  ;;  %vm170_vm3 = vcmp.eq.f32.partialorder %v169_v27, 8.507059e+37 }
  0xd1   :  { %v199_v15 = vadd.f32 1.0, %v198_v12  ;;  %v188_v36 = vadd.f32 1.1283791, %v187_v24  ;;  %v325_v24 = vperm.slane %v620_v57, 2 }
  0xd3   :  { %395 = vrcp.f32 %v199_v15  ;;  %v211_v37 = vand.u32 2147483648, %v199_v15  ;;  %v209_v41 = vand.u32 2147483647, %v199_v15  ;;  %vm205_vm5 = vweird.f32 %v199_v15 }
  0xd4   :  { %v394_v16 = vpop.eup %393  ;;  %v189_v46 = vmul.f32 %v188_v36, %v603_v38  ;;  %v272_v38 = vperm.slane %v620_v57, 0 }
  0xd5   :  { %v161_v19 = vmul.f32 %v394_v16, %v159_v9  ;;  %vm166_vm0 = vweird.f32 %v394_v16  ;;  %v212_v45 = vor.u32 1.1754944e-38, %v211_v37  ;;  %vm210_vm7 = vcmp.eq.f32.partialorder %v209_v41, 8.507059e+37 }
  0xd6   :  { %vm167_vm2 = vmor %vm165_vm1, %vm166_vm0 }
  0xd7   :  { %v162_v20 = vsub.f32 1.0, %v161_v19 }
  0xd9   :  { %v396_v23 = vpop.eup %395  ;;  %v163_v25 = vmul.f32 %v394_v16, %v162_v20 }
  0xda   :  { %v201_v29 = vmul.f32 %v396_v23, %v199_v15  ;;  %vm206_vm4 = vweird.f32 %v396_v23 }
  0xdb   :  { %v164_v30 = vadd.f32 %v394_v16, %v163_v25  ;;  %vm207_vm6 = vmor %vm205_vm5, %vm206_vm4 }
  0xdc   :  { %v202_v33 = vsub.f32 1.0, %v201_v29 }
  0xdd   :  { %v168_v34 = vsel %vm167_vm2, %v394_v16, %v164_v30 }
  0xde   :  { %v173_v39 = vsel %vm170_vm3, %v172_v32, %v168_v34  ;;  %v203_v40 = vmul.f32 %v396_v23, %v202_v33 }
  0xdf   :  { %v174_v42 = vmul.f32 %v173_v39, %v149_v31 }
  0xe0   :  { %v204_v43 = vadd.f32 %v396_v23, %v203_v40 }
  0xe1   :  { %v351_v44 = vclamps-f32 %v174_v42, 1.0 }
  0xe2   :  { %v208_v28 = vsel %vm207_vm6, %v396_v23, %v204_v43 }
  0xe3   :  { %v217_v48 = vadd.f32 1.0, %v351_v44  ;;  %v213_v49 = vsel %vm210_vm7, %v212_v45, %v208_v28 }
  0xe4   :  { %v214_v50 = vmul.f32 %v213_v49, %v189_v46 }
  0xe5   :  { %v219_v51 = vmul.f32 %v217_v48, %v133_v47 }
  0xe6   :  { %v352_v52 = vclamps-f32 %v214_v50, 1.0 }
  0xe7   :  { %255 = vmatmul.f32.vlgmr.msra.gmra.mxu1 %v219_v51 }
  0xe8   :  { %v218_v54 = vadd.f32 1.0, %v352_v52 }
  0xea   :  { %v220_v55 = vmul.f32 %v218_v54, %v134_v53 }
  0xec   :  { %258 = vmatmul.f32.vlgmr.msra.gmra.mxu3 %v220_v55 }
 0x164   :  { %v256_v59 = vpop.f32.mrf.mxu1 }
 0x165   :  { %v273_v26 = vadd.f32 %v272_v38, %v256_v59 }
 0x167   :  { %v278_v60 = vsel %vm277_vm8, %v273_v26, 0.0 }
 0x168   :  { %280 = vadd.xlane.f32.xlu0 %v278_v60 }
 0x16f   :  { %v259_v61 = vpop.f32.mrf.mxu3 }
 0x170   :  { %v274_v62 = vadd.f32 %v272_v38, %v259_v61 }
 0x172   :  { %v279_v63 = vsel %vm277_vm8, %v274_v62, 0.0 }
 0x173   :  { %282 = vadd.xlane.f32.xlu0 %v279_v63 }
 0x1db   :  { %v281_v35 = vpop.xlane.xlu0 %280 }
 0x1dc   :  { %v284_v0 = vmul.f32 0.03125, %v281_v35 }
 0x1de   :  { %v286_v1 = vsub.f32 %v273_v26, %v284_v0 }
 0x1e0   :  { %v288_v2 = vsel %vm277_vm8, %v286_v1, 0.0 }
 0x1e1   :  { %v290_v3 = vmul.f32 %v288_v2, %v288_v2 }
 0x1e3   :  { %292 = vadd.xlane.f32.xlu1 %v290_v3 }
 0x1e6   :  { %v283_v4 = vpop.xlane.xlu0 %282 }
 0x1e7   :  { %v285_v5 = vmul.f32 0.03125, %v283_v4 }
 0x1e9   :  { %v287_v6 = vsub.f32 %v274_v62, %v285_v5 }
 0x1eb   :  { %v289_v7 = vsel %vm277_vm8, %v287_v6, 0.0 }
 0x1ec   :  { %v291_v8 = vmul.f32 %v289_v7, %v289_v7 }
 0x1ee   :  { %294 = vadd.xlane.f32.xlu1 %v291_v8 }
 0x256   :  { %v293_v9 = vpop.xlane.xlu1 %292 }
 0x257   :  { %v296_v10 = vmul.f32 0.03125, %v293_v9 }
 0x259   :  { %v298_v11 = vadd.f32 1e-06, %v296_v10 }
 0x25b   :  { %397 = vrsqrt.f32 %v298_v11  ;;  %vm306_vm10 = vweird.f32 %v298_v11 }
 0x261   :  { %v398_v12 = vpop.eup %397  ;;  %v295_v13 = vpop.xlane.xlu1 %294 }
 0x262   :  { %v301_v14 = vmul.f32 %v398_v12, %v298_v11  ;;  %v297_v15 = vmul.f32 0.03125, %v295_v13  ;;  %vm307_vm9 = vweird.f32 %v398_v12 }
 0x263   :  { %vm308_vm11 = vmor %vm306_vm10, %vm307_vm9 }
 0x264   :  { %v302_v16 = vmul.f32 %v398_v12, %v301_v14  ;;  %v299_v17 = vadd.f32 1e-06, %v297_v15 }
 0x266   :  { %v303_v18 = vmul.f32 0.5, %v302_v16  ;;  %399 = vrsqrt.f32 %v299_v17  ;;  %vm316_vm13 = vweird.f32 %v299_v17 }
 0x268   :  { %v304_v19 = vsub.f32 1.5, %v303_v18 }
 0x26a   :  { %v305_v20 = vmul.f32 %v398_v12, %v304_v19 }
 0x26c   :  { %v400_v22 = vpop.eup %399  ;;  %v309_v23 = vsel %vm308_vm11, %v398_v12, %v305_v20 }
 0x26d   :  { %v320_v25 = vmul.f32 %v309_v23, %v288_v2  ;;  %v311_v27 = vmul.f32 %v400_v22, %v299_v17  ;;  %vm317_vm12 = vweird.f32 %v400_v22 }
 0x26e   :  { %vm318_vm14 = vmor %vm316_vm13, %vm317_vm12 }
 0x26f   :  { %v312_v29 = vmul.f32 %v400_v22, %v311_v27  ;;  %v323_v30 = vmul.f32 %v322_v21, %v320_v25 }
 0x271   :  { %v313_v31 = vmul.f32 0.5, %v312_v29  ;;  %v326_v32 = vadd.f32 %v325_v24, %v323_v30 }
 0x273   :  { %v314_v33 = vsub.f32 1.5, %v313_v31  ;;  %328 = vst [vmem:[#allocation11] sm:$0xff] %v326_v32 }
 0x275   :  { %v315_v36 = vmul.f32 %v400_v22, %v314_v33 }
 0x277   :  { %v319_v34 = vsel %vm318_vm14, %v400_v22, %v315_v36 }
 0x278   :  { %v321_v37 = vmul.f32 %v319_v34, %v289_v7 }
 0x27a   :  { %v324_v39 = vmul.f32 %v322_v21, %v321_v37 }
 0x27c   :  { %v327_v40 = vadd.f32 %v325_v24, %v324_v39 }
 0x27e   :  { %329 = vst [vmem:[#allocation11 + $0x8] sm:$0xff] %v327_v40 }
 0x27f   :  { %342 = dma.vmem_to_hbm [thread:$0]  %s335_s13, 256, %s337_s16, [#allocation5], %s530_s26, %s530_s26, %s531_s27  }
 0x280   :  { %527 = dma.done.wait [#allocation5], 256  }
 0x281   :  { %528 = vsyncadd [#allocation5], 4294967040 }
 0x282   :  { %347 = vsyncpa [#allocation4], 1 }
 0x283   :  { %348 = vsyncpa [#allocation7], 1 }
 0x284   :  { %349 = vsyncpa [#allocation10], 1 }
 0x285   :  { %350 = vsyncpa [#allocation5], 1 }

</bundles_post_ra>
